<compile_context>
chip_gen: v7x
topology: tpu7x:2x2x1
jax: 0.10.0
libtpu: 0.0.40
codegen_flags: <defaults>
</compile_context>

<pallas_src>
import numpy as np
import jax
import jax.numpy as jnp
from jax.experimental import pallas as pl
from jax.experimental.pallas import tpu as pltpu


def bn_relu_conv_pool_kernel(x_ref, scale_ref, bias_ref, w_ref, o_ref):
    # x_ref:     (1, 4*Cin, TS) f32  -- sublanes = (window position p, channel c),
    #                                   lanes = pooled spatial positions of this tile.
    # scale_ref: (4*Cin, 1) f32      -- folded BN scale, tiled over the 4 window positions.
    # bias_ref:  (4*Cin, 1) f32
    # w_ref:     (Cout, 4*Cin) bf16  -- 0.25 * [w | w | w | w]: 1x1 conv + exact 2x2
    #                                   avg-pool folded into one contraction of depth 4*Cin.
    # o_ref:     (1, Cout, TS) f32   -- lane-dense output block, already (C, H*W)-ordered.
    y = jnp.maximum(x_ref[0] * scale_ref[...] + bias_ref[...], 0.0)            # BN + ReLU (VPU)
    o_ref[0] = jnp.dot(w_ref[...], y.astype(jnp.bfloat16),                     # conv + pool (MXU)
                       preferred_element_type=jnp.float32).astype(o_ref.dtype)


def _pick_spatial_tile(s):
    """Cap the lane-axis tile so per-block VMEM stays bounded (v7x: 64 MiB phys / 32 MiB scoped)."""
    for ts in (2048, 1024, 512, 256, 128):
        if s > ts and s % ts == 0:
            return ts
    return s


def transition_forward(x_nchw, gamma, beta, conv_w, eps=1e-5):
    """BN(train-mode) -> ReLU -> 1x1 conv (no bias) -> 2x2 avg-pool.  NCHW in / NCHW out."""
    N, Cin, H, W = x_nchw.shape
    Cout = conv_w.shape[0]
    Ho, Wo = H // 2, W // 2
    S = Ho * Wo               # pooled spatial positions per image
    K = 4 * Cin               # contraction depth: 4 window positions x input channels

    # --- training-mode BatchNorm statistics: single fused pass, var = E[x^2] - mean^2 ---
    # TODO(synk): eval-mode BatchNorm (running stats) is not implemented; the per-channel
    # batch-stat scalar reduction stays in glue JAX.
    mean = jnp.mean(x_nchw, axis=(0, 2, 3))
    var = jnp.mean(x_nchw * x_nchw, axis=(0, 2, 3)) - mean * mean   # biased variance
    scale = gamma * jax.lax.rsqrt(var + eps)
    bias = beta - mean * scale
    scale_k = jnp.tile(scale, 4).reshape(K, 1).astype(jnp.float32)
    bias_k = jnp.tile(bias, 4).reshape(K, 1).astype(jnp.float32)

    # Fold the exact 2x2 average pool into the 1x1 conv weight (both linear, pool after conv):
    #   out[o, m] = sum_{p, c} (0.25 * w[o, c]) * y[p*Cin + c, m]      (0.25 is exact in bf16)
    w2d = conv_w.reshape(Cout, Cin)
    w_pool = (0.25 * jnp.tile(w2d, (1, 4))).astype(jnp.bfloat16)                # (Cout, 4*Cin)

    # NCHW -> (N, 4*Cin, Ho*Wo): stack each 2x2 window along the contraction axis.
    # Single layout pass in the wrapper; the kernel output is already NCHW-ordered, so there
    # is no output transpose.
    # TODO(synk): in a full network this rearrangement would be hoisted once per segment.
    x6 = x_nchw.reshape(N, Cin, Ho, 2, Wo, 2)                    # (n, c, i, di, j, dj)
    xw = jnp.transpose(x6, (0, 3, 5, 1, 2, 4)).reshape(N, K, S)  # k = (2*di+dj)*Cin + c

    TS = _pick_spatial_tile(S)
    grid = (N, S // TS)

    out = pl.pallas_call(
        bn_relu_conv_pool_kernel,
        out_shape=jax.ShapeDtypeStruct((N, Cout, S), jnp.float32),
        grid=grid,
        in_specs=[
            pl.BlockSpec((1, K, TS), lambda n, s: (n, 0, s)),
            pl.BlockSpec((K, 1), lambda n, s: (0, 0)),
            pl.BlockSpec((K, 1), lambda n, s: (0, 0)),
            pl.BlockSpec((Cout, K), lambda n, s: (0, 0)),
        ],
        out_specs=pl.BlockSpec((1, Cout, TS), lambda n, s: (n, 0, s)),
        compiler_params=pltpu.CompilerParams(
            dimension_semantics=("parallel", "parallel")),
    )(xw, scale_k, bias_k, w_pool)

    # (N, Cout, Ho*Wo) is already channel-major -> final NCHW without any transpose.
    return out.reshape(N, Cout, Ho, Wo)


def transition_reference(x_nchw, gamma, beta, conv_w, eps=1e-5):
    """Pure-JAX f32 reference mirroring the PyTorch forward."""
    N, Cin, H, W = x_nchw.shape
    Cout = conv_w.shape[0]
    mean = jnp.mean(x_nchw, axis=(0, 2, 3))
    var = jnp.mean((x_nchw - mean[None, :, None, None]) ** 2, axis=(0, 2, 3))
    xn = (x_nchw - mean[None, :, None, None]) / jnp.sqrt(var + eps)[None, :, None, None]
    xn = xn * gamma[None, :, None, None] + beta[None, :, None, None]
    y = jnp.maximum(xn, 0.0)
    conv = jnp.einsum("nchw,oc->nohw", y, conv_w.reshape(Cout, Cin))
    pooled = conv.reshape(N, Cout, H // 2, 2, W // 2, 2).mean(axis=(3, 5))
    return pooled


if __name__ == "__main__":
    N, Cin, Cout, H, W = 2, 4, 8, 16, 16

    key = jax.random.PRNGKey(0)
    kx, kg, kb, kw = jax.random.split(key, 4)

    x = jax.random.normal(kx, (N, Cin, H, W), dtype=jnp.float32)
    gamma = 1.0 + 0.1 * jax.random.normal(kg, (Cin,), dtype=jnp.float32)   # bn.weight
    beta = 0.1 * jax.random.normal(kb, (Cin,), dtype=jnp.float32)          # bn.bias
    conv_w = jax.random.normal(kw, (Cout, Cin, 1, 1), dtype=jnp.float32) * np.sqrt(2.0 / Cin)

    out = transition_forward(x, gamma, beta, conv_w)
    out = jax.block_until_ready(out)

    ref = transition_reference(x, gamma, beta, conv_w)
    assert out.shape == (N, Cout, H // 2, W // 2), out.shape
    # bf16 MXU operands with f32 accumulation -> compare at bf16-appropriate tolerance.
    np.testing.assert_allclose(np.asarray(out), np.asarray(ref), atol=5e-2, rtol=5e-2)

    print("KERNEL_OK")
</pallas_src>

<mosaic_0001>
module attributes {stable_mosaic.version = 11 : i64} {
  func.func @bn_relu_conv_pool_kernel(%arg0: i32, %arg1: i32, %arg2: memref<1x16x64xf32, #tpu.memory_space<vmem>>, %arg3: memref<16x1xf32, #tpu.memory_space<vmem>>, %arg4: memref<16x1xf32, #tpu.memory_space<vmem>>, %arg5: memref<8x16xbf16, #tpu.memory_space<vmem>>, %arg6: memref<1x8x64xf32, #tpu.memory_space<vmem>>) attributes {dimension_semantics = [#tpu.dimension_semantics<parallel>, #tpu.dimension_semantics<parallel>], iteration_bounds = array<i64: 2, 1>, scalar_prefetch = 0 : i64, scratch_operands = 0 : i64, tpu.core_type = #tpu.core_type<tc>, window_params = [{transform_indices = @transform_0, window_bounds = array<i64: 1, 16, 64>}, {pipeline_mode = #tpu.pipeline_mode<synchronous>, transform_indices = @transform_1, window_bounds = array<i64: 16, 1>}, {pipeline_mode = #tpu.pipeline_mode<synchronous>, transform_indices = @transform_2, window_bounds = array<i64: 16, 1>}, {pipeline_mode = #tpu.pipeline_mode<synchronous>, transform_indices = @transform_3, window_bounds = array<i64: 8, 16>}, {transform_indices = @transform_4, window_bounds = array<i64: 1, 8, 64>}]} {
    %c0 = arith.constant 0 : index
    %c0_0 = arith.constant 0 : index
    %c0_1 = arith.constant 0 : index
    %0 = vector.load %arg2[%c0, %c0_0, %c0_1] : memref<1x16x64xf32, #tpu.memory_space<vmem>>, vector<1x16x64xf32>
    %1 = vector.shape_cast %0 : vector<1x16x64xf32> to vector<16x64xf32>
    %c0_2 = arith.constant 0 : index
    %c0_3 = arith.constant 0 : index
    %2 = vector.load %arg3[%c0_2, %c0_3] : memref<16x1xf32, #tpu.memory_space<vmem>>, vector<16x1xf32>
    %3 = vector.broadcast %2 : vector<16x1xf32> to vector<16x64xf32>
    %4 = arith.mulf %1, %3 : vector<16x64xf32>
    %c0_4 = arith.constant 0 : index
    %c0_5 = arith.constant 0 : index
    %5 = vector.load %arg4[%c0_4, %c0_5] : memref<16x1xf32, #tpu.memory_space<vmem>>, vector<16x1xf32>
    %6 = vector.broadcast %5 : vector<16x1xf32> to vector<16x64xf32>
    %7 = arith.addf %4, %6 : vector<16x64xf32>
    %cst = arith.constant 0.000000e+00 : f32
    %8 = vector.broadcast %cst : f32 to vector<16x64xf32>
    %9 = arith.maximumf %7, %8 : vector<16x64xf32>
    %c0_6 = arith.constant 0 : index
    %c0_7 = arith.constant 0 : index
    %10 = vector.load %arg5[%c0_6, %c0_7] : memref<8x16xbf16, #tpu.memory_space<vmem>>, vector<8x16xbf16>
    %11 = arith.truncf %9 : vector<16x64xf32> to vector<16x64xbf16>
    %cst_8 = arith.constant dense<0.000000e+00> : vector<8x64xf32>
    %12 = tpu.matmul %10, %11, %cst_8 {dimension_numbers = #tpu.dot_dimension_numbers<[1], [0], [0], [1], [0, 0, 1, 1], [], []>} : vector<8x16xbf16>, vector<16x64xbf16>, vector<8x64xf32> -> vector<8x64xf32>
    %c0_9 = arith.constant 0 : index
    %c0_10 = arith.constant 0 : index
    %c0_11 = arith.constant 0 : index
    %13 = vector.load %arg6[%c0_9, %c0_10, %c0_11] : memref<1x8x64xf32, #tpu.memory_space<vmem>>, vector<1x8x64xf32>
    %14 = vector.shape_cast %13 : vector<1x8x64xf32> to vector<8x64xf32>
    %15 = vector.shape_cast %12 : vector<8x64xf32> to vector<1x8x64xf32>
    tpu.vector_store %arg6[%c0_9, %c0_10, %c0_11], %15 {strides = array<i32>} : memref<1x8x64xf32, #tpu.memory_space<vmem>>, vector<1x8x64xf32>,
    return
  }
  func.func @transform_0(%arg0: i32, %arg1: i32) -> (i32, i32, i32) {
    %c0_i32 = arith.constant 0 : i32
    %c0_i32_0 = arith.constant 0 : i32
    return %arg0, %c0_i32, %arg1 : i32, i32, i32
  }
  func.func @transform_1(%arg0: i32, %arg1: i32) -> (i32, i32) {
    %c0_i32 = arith.constant 0 : i32
    %c0_i32_0 = arith.constant 0 : i32
    %c0_i32_1 = arith.constant 0 : i32
    return %c0_i32, %c0_i32_0 : i32, i32
  }
  func.func @transform_2(%arg0: i32, %arg1: i32) -> (i32, i32) {
    %c0_i32 = arith.constant 0 : i32
    %c0_i32_0 = arith.constant 0 : i32
    %c0_i32_1 = arith.constant 0 : i32
    return %c0_i32, %c0_i32_0 : i32, i32
  }
  func.func @transform_3(%arg0: i32, %arg1: i32) -> (i32, i32) {
    %c0_i32 = arith.constant 0 : i32
    %c0_i32_0 = arith.constant 0 : i32
    %c0_i32_1 = arith.constant 0 : i32
    return %c0_i32, %c0_i32_0 : i32, i32
  }
  func.func @transform_4(%arg0: i32, %arg1: i32) -> (i32, i32, i32) {
    %c0_i32 = arith.constant 0 : i32
    %c0_i32_0 = arith.constant 0 : i32
    return %arg0, %c0_i32, %arg1 : i32, i32, i32
  }
}

</mosaic_0001>

<bundles_post_ra>
// kernel: tpu_custom_call.1
= control target key start
LH: loop header
LB: loop body
LE: loop exit
PB: predicated region body
PF: predicated region fallthrough
CT: control target
= control target key end

     0   :  { %9 = vsyncpa [#allocation3], 0  ;;  %s709_s0 = inlined_call_operand.vmem [shape: f32[2,16,64], index: 0, kind: input, shape index: {}]   ;;  %s710_s1 = inlined_call_operand.vmem [shape: f32[16,1], index: 1, kind: input, shape index: {}]   ;;  %s711_s2 = inlined_call_operand.vmem [shape: f32[16,1], index: 2, kind: input, shape index: {}]   ;;  %s712_s3 = inlined_call_operand.vmem [shape: bf16[8,16], index: 3, kind: input, shape index: {}]   ;;  %s713_s4 = inlined_call_operand.hbm [shape: f32[2,8,64], index: 4, kind: output, shape index: {}]  }
   0x1   :  { %11 = vsyncpa [#allocation3 + $0x1], 0  ;;  %s582_s15 = smov 0   ;;  %s584_s16 = smov 0  }
   0x2   :  { %s586_s17 = smov 0   ;;  %s588_s18 = smov 0  }
   0x3   :  { %s590_s19 = smov 0   ;;  %s592_s20 = smov 0  }
   0x4 LB: > { %s391_s21 = sadd.s32 4294967295, %s551_s20   ;;  %s392_s22 = sadd.s32 4294967294, %s551_s20   ;;  %s551_s20 = sphi %s592_s20, %s17_s20   ;;  %s547_s19 = sphi %s590_s19, %s720_s19   ;;  %s543_s18 = sphi %s588_s18, %s719_s18   ;;  %s539_s17 = sphi %s586_s17, %s718_s17   ;;  %s535_s16 = sphi %s584_s16, %s717_s16   ;;  %s531_s15 = sphi %s582_s15, %s716_s15  }
   0x5   : > { %s29_s23 = sadd.s32 1, %s547_s19  ;;  %s129_s24 = sadd.s32 1, %s539_s17 }
   0x6   : > { %p31_p0 = scmp.ge.s32.totalorder %s29_s23, 2  ;;  %p139_p1 = scmp.ne.s32.totalorder %s539_s17, %s535_s16 }
   0x7   : > { %p140_p2 = scmp.eq.s32.totalorder %s391_s21, 1  ;;  %p145_p3 = scmp.ne.s32.totalorder %s535_s16, %s531_s15 }
   0x8   : > { %s722_s23 = smov (%p31_p0, %s29_s23), 0  ;;  %p146_p5 = scmp.eq.s32.totalorder %s392_s22, 1 }
   0x9   : > { %p622_p4 = por %p140_p2, %p139_p1  ;;  %s124_s26 = ssub.s32 %s547_s19, %s722_s23 }
   0xa   : > { %p395_p6 = scmp.ge.s32.totalorder %s551_s20, 1  ;;  %p127_p7 = scmp.eq.s32.totalorder %s124_s26, 0 }
   0xb   : > { %p629_p8 = por %p146_p5, %p145_p3  ;;  %p184_p9 = scmp.lt.s32.totalorder %s551_s20, 3 }
   0xc   : > { %s635_s28 = scalar_select %p127_p7, %s539_s17, %s129_s24  }
   0xd   : > { %p185_p10 = pnand %p395_p6, %p184_p9 }
   0xe   : > { %v238_v0 = vld [vmem:[%s711_s2] sm:$0xff] (!%p185_p10)  ;;  %v553_v2 = vmov (!%p185_p10), 0   ;;  %v239_v3 = vld [vmem:[%s711_s2 + $0x8] sm:$0xff] (!%p185_p10)  ;;  %v554_v5 = vmov (!%p185_p10), 0.0   ;;  %vm555_vm0 = vmmov (!%p185_p10), 0   ;;  %p213_p11 = scmp.lt.s32.totalorder (!%p185_p10), %s543_s18, 1 }
   0xf   : > { %188 = sbr.rel (%p185_p10) target bundleno = 386 (0x182), region = 36  ;;  %v224_v1 = vld [vmem:[%s710_s1] sm:$0xff] (!%p185_p10)  ;;  %472 = vset.pattern.permute.xlu1 (!%p185_p10), %v553_v2  ;;  %471 = vset.pattern.permute.xlu0 (!%p185_p10), %v553_v2  ;;  %v225_v4 = vld [vmem:[%s710_s1 + $0x8] sm:$0xff] (!%p185_p10)  ;;  %vm256_vm1 = vcmask (!%p185_p10), 130048   ;;  %s210_s26 = sand.u32 (!%p185_p10), 1, %s535_s16   ;;  %vm300_vm2 = vcmask (!%p185_p10), 523264  }
  0x10   : > { %242 = vperm.xlu1 (!%p185_p10), %472, %v238_v0   ;;  %228 = vperm.xlu0 (!%p185_p10), %471, %v224_v1   ;;  %v254_v19 = vld [vmem:[%s712_s3] sm:$0xf] (!%p185_p10)  ;;  %s396_s29 = sshll.u32 (!%p185_p10), %s210_s26, 3  ;;  %s401_s30 = sshll.u32 (!%p185_p10), %s543_s18, 7 }
  0x11   : > { %407 = vmatprep.subr.bf16.mxu0 (!%p185_p10), %v554_v5  ;;  %409 = vmatprep.mubr.msk.bf16.mxu0 (!%p185_p10), %vm555_vm0, %v554_v5  ;;  %s212_s5 = scalar_lea.vmem (!%p185_p10), [#allocation2], %s396_s29  ;;  %s662_s9 = scalar_lea.hbm (!%p185_p10), %s713_s4, %s401_s30 }
  0x12   : > { %s317_s6 = sshll.u32 (!%p185_p10), %s212_s5, 4  ;;  %s303_s10 = scalar_lea.sflag (!%p185_p10), [#allocation3], %s210_s26  ;;  %s664_s6 = int_to_ptr.vmem [resolvable:$true] %s317_s6 }
  0x14   : > { %247 = vperm.xlu1 (!%p185_p10), %472, %v239_v3   ;;  %233 = vperm.xlu0 (!%p185_p10), %471, %v225_v4  }
  0x16   : > { %s214_s11 = scalar_select %p213_p11, %s543_s18, 1 }
  0x17   : > { %s556_s18 = smov [#allocation2]  }
  0x18   : > { %s404_s12 = sshll.u32 %s214_s11, 4  ;;  %s473_s11 = scalar_lea.vmem %s664_s6, 128 }
  0x19   : > { %s220_s21 = scalar_lea.vmem %s709_s0, %s404_s12  ;;  %p474_p12 = scmp.ne.s32.totalorder %s664_s6, %s473_s11 }
  0x1a   : > { %v222_v6 = vld [vmem:[%s220_s21] sm:$0xff]  ;;  %v223_v10 = vld [vmem:[%s220_s21 + $0x8] sm:$0xff]  ;;  %s477_s12 = sshll.u32 %s556_s18, 4  ;;  %s478_s12 = int_to_ptr.vmem [resolvable:$false] %s477_s12 }
  0x1b   : > { %p475_p13 = pnand %p474_p12, %p622_p4  ;;  %s479_s13 = scalar_lea.vmem %s478_s12, 256 }
  0x1c   : > { %p480_p1 = scmp.lt.s32.totalorder %s664_s6, %s478_s12  ;;  %p481_p2 = scmp.lt.s32.totalorder %s479_s13, %s473_s11 }
  0x1d   : > { %p476_p0 = pneg %p475_p13 }
  0x1e   : > { %p482_p3 = por %p481_p2, %p480_p1 }
  0x20   : > { %p483_p5 = pnand %p482_p3, %p476_p0 }
  0x8f   : > { %v243_v7 = vpop.permute.xlu1 %242  ;;  %v229_v8 = vpop.permute.xlu0 %228 }
  0x90   : > { %v236_v9 = vmul.f32 %v229_v8, %v222_v6 }
  0x92   : > { %v250_v12 = vadd.f32 %v243_v7, %v236_v9 }
  0x93   : > { %v234_v11 = vpop.permute.xlu0 %233  ;;  %v248_v14 = vpop.permute.xlu1 %247 }
  0x94   : > { %v237_v13 = vmul.f32 %v234_v11, %v223_v10  ;;  %v252_v16 = vmax.f32 %v250_v12, 0.0 }
  0x96   : > { %v251_v15 = vadd.f32 %v248_v14, %v237_v13 }
  0x98   : > { %v253_v17 = vmax.f32 %v251_v15, 0.0 }
  0x9a   : > { %v255_v18 = vpack.c.bf16 %v253_v17, %v252_v16 }
  0x9c   : > { %408 = vmatpush3.bf16.msra.mxu0 %v255_v18 }
  0x9f   : > { %410 = vmatmul.mubr.msk.bf16.vlgmr.msra.gmra.mrb[0].mxu0 %vm256_vm1, %v254_v19 }
 0x172   : > { %v294_v20 = vpop.f32.mrb[0].mxu0 }
 0x173   : > { %301 = vst.msk [vmem:[%s212_s5] sm:$0xff] %vm300_vm2, %v294_v20  ;;  %v411_v21 = vpop.f32.mrb[1].mxu0 }
 0x174   : > { %v297_v22 = vpop.f32.mrb[2].mxu0 }
 0x175   : > { %486 = shalt.err (!%p483_p5)
}
 0x176   : > { %s487_s14 = scalar_lea.hbm %s662_s9, 128  ;;  %s491_s24 = scalar_lea.hbm %s713_s4, 256 }
 0x177   : > { %p488_p6 = scmp.ne.s32.totalorder %s662_s9, %s487_s14  ;;  %p492_p10 = scmp.lt.u32.totalorder %s662_s9, %s713_s4 }
 0x178   : > { %p493_p11 = scmp.lt.u32.totalorder %s491_s24, %s487_s14  ;;  %p495_p13 = scmp.lt.u32.totalorder %s487_s14, %s662_s9 }
 0x179   : > { %p489_p7 = pnand %p488_p6, %p622_p4 }
 0x17a   : > { %p494_p12 = por %p493_p11, %p492_p10 }
 0x17b   : > { %p490_p9 = pneg %p489_p7 }
 0x17c   : > { %p496_p0 = por %p495_p13, %p494_p12 }
 0x17e   : > { %p497_p1 = pnand %p496_p0, %p490_p9 }
 0x180   : > { %500 = shalt.err (!%p497_p1)
}
 0x181   : > { %413 = dma.vmem_to_hbm [thread:$0]  (%p622_p4), %s664_s6, 128, %s662_s9, %s303_s10   ;;  %v412_v23 = vpop.f32.mrb[3].mxu0 }
 0x182 PF: > { %p419_p2 = scmp.ge.s32.totalorder %s551_s20, 2  ;;  %s329_s30 = sand.u32 1, %s531_s15  }
 0x183   : > { %s330_s5 = scalar_lea.sflag [#allocation3], %s329_s30 }
 0x184   : > { %p416_p3 = pnand %p419_p2, %p629_p8 }
 0x186   : > { %526 = dma.done.wait (!%p416_p3), %s330_s5, 128  }
 0x187   : > { %528 = vsyncadd (!%p416_p3), %s330_s5, 4294967168  ;;  %s17_s20 = sadd.s32 1, %s551_s20   ;;  %s716_s15 = smov %s535_s16 }
 0x188   : > { %p14_p5 = scmp.ge.s32.totalorder %s17_s20, 4   ;;  %s717_s16 = smov %s539_s17 }
 0x189   : > { %s718_s17 = smov %s635_s28  ;;  %s719_s18 = smov %s547_s19 }
 0x18a   : > { %s720_s19 = smov %s722_s23  ;;  %16 = sbr.rel (!%p14_p5) target bundleno = 4 (0x4), region = 71 }
 0x191   :  { %335 = vsyncpa [#allocation3], 1 }
 0x192   :  { %337 = vsyncpa [#allocation3 + $0x1], 1 }

</bundles_post_ra>
